<compile_context>
chip_gen: v5e
topology: v5e:2x2
jax: 0.10.0
libtpu: 0.0.40
codegen_flags: <defaults>
</compile_context>

<pallas_src>
import jax
import jax.numpy as jnp
from jax.experimental import pallas as pl
from jax.experimental.pallas import tpu as pltpu


def _normalize_kernel(x_ref, scale_ref, bias_ref, o_ref):
    """One (row_block, cols) tile: out = x * scale + bias (per-row affine).

    scale_ref / bias_ref are small, fully VMEM-resident (padded_rows, 1)
    columns; slice the rows belonging to this grid step in-kernel.
    """
    rb = x_ref.shape[0]                                  # static block rows
    start = pl.multiple_of(pl.program_id(0) * rb, 8)     # aligned sublane start
    scale = scale_ref[pl.ds(start, rb), :]               # (rb, 1)
    bias = bias_ref[pl.ds(start, rb), :]                 # (rb, 1)
    # f32 math preserves (x - mean)/std accuracy for integer / low-precision
    # inputs. TODO(synk): bf16-native FMA path on v6e/v7x would halve temp
    # vreg/VMEM pressure (headroom-only; kernel stays HBM-bound).
    x = x_ref[...].astype(jnp.float32)
    o_ref[...] = (x * scale + bias).astype(o_ref.dtype)


def _pick_row_block(rows, cols, in_itemsize, out_itemsize, vmem_tile_bytes,
                    min_steps):
    """Row block that (a) fits the per-buffer VMEM tile budget, (b) leaves at
    least ~min_steps grid steps so the DMA-in / compute / DMA-out pipeline can
    overlap (a 1-step grid has zero read/write overlap), and (c) is a multiple
    of the input dtype's sublane packing."""
    sublane_mult = 8 * max(1, 4 // max(1, in_itemsize))  # 8 f32 / 16 bf16 / 32 i8
    if rows <= sublane_mult:
        return rows                                      # tiny input: full-dim block
    bytes_per_row = max(1, cols * max(in_itemsize, out_itemsize))
    cap_vmem = max(1, vmem_tile_bytes // bytes_per_row)
    cap_steps = max(1, rows // min_steps)                # keep >= ~min_steps steps
    target = max(1, min(cap_vmem, cap_steps))
    row_block = max(sublane_mult, (target // sublane_mult) * sublane_mult)
    row_block = min(row_block, rows)
    # Best-effort nudge to an even step count so v7x's two TensorCores both
    # get work under dimension_semantics=("parallel",). No-op on v5e/v6e.
    steps = -(-rows // row_block)
    if steps > 1 and steps % 2 == 1:
        rb = row_block
        while rb - sublane_mult >= sublane_mult:
            rb -= sublane_mult
            if (-(-rows // rb)) % 2 == 0:
                row_block = rb
                break
    return row_block


def normalize(x, mean, std, *, vmem_tile_bytes=6 << 20, min_steps=8):
    """Pallas equivalent of Normalize.forward (NCHW, per-channel mean/std)."""
    N, C, H, W = x.shape
    assert mean.shape == (C,) and std.shape == (C,)

    # PyTorch promotes integer inputs against the float buffers; mirror that.
    out_dtype = x.dtype if jnp.issubdtype(x.dtype, jnp.floating) else jnp.float32

    rows, cols = N * C, H * W
    x2 = x.reshape(rows, cols)

    # Lane-dense output: pad the flattened spatial dim to a multiple of 128 so
    # stores are full-width vst rather than masked partial stores. No-op when
    # H*W % 128 == 0 (e.g. 16x16, 224x224).
    cols_p = cols if cols % 128 == 0 else ((cols + 127) // 128) * 128
    if cols_p != cols:
        x2 = jnp.pad(x2, ((0, 0), (0, cols_p - cols)))

    in_isz = x.dtype.itemsize
    out_isz = jnp.dtype(out_dtype).itemsize
    row_block = _pick_row_block(rows, cols_p, in_isz, out_isz,
                                vmem_tile_bytes, min_steps)
    num_steps = pl.cdiv(rows, row_block)
    grid = (num_steps,)

    # Per-row affine params computed once: y = x * (1/std) + (-mean/std).
    # Padded to num_steps*row_block rows so in-kernel slices never go OOB.
    padded_rows = num_steps * row_block
    inv_std = 1.0 / std.astype(jnp.float32)
    scale = jnp.pad(jnp.tile(inv_std, N),
                    (0, padded_rows - rows)).reshape(padded_rows, 1)
    bias = jnp.pad(jnp.tile(-mean.astype(jnp.float32) * inv_std, N),
                   (0, padded_rows - rows)).reshape(padded_rows, 1)

    # Explicit scoped-VMEM budget: double-buffered in + out tiles, resident
    # scale/bias, ~15% headroom. Capped under v7x's 64 MiB physical VMEM.
    in_tile = row_block * cols_p * in_isz
    out_tile = row_block * cols_p * out_isz
    resident = 2 * padded_rows * 4
    vmem_limit = int(1.15 * (2 * in_tile + 2 * out_tile + resident)) + (2 << 20)
    vmem_limit = max(vmem_limit, 8 << 20)
    vmem_limit = min(vmem_limit, 48 << 20)

    x_spec = pl.BlockSpec((row_block, cols_p), lambda i: (i, 0))
    out_spec = pl.BlockSpec((row_block, cols_p), lambda i: (i, 0))
    vec_spec = pl.BlockSpec(memory_space=pltpu.MemorySpace.VMEM)  # whole array resident

    out2 = pl.pallas_call(
        _normalize_kernel,
        out_shape=jax.ShapeDtypeStruct((rows, cols_p), out_dtype),
        grid=grid,
        in_specs=[x_spec, vec_spec, vec_spec],
        out_specs=out_spec,
        compiler_params=pltpu.CompilerParams(
            dimension_semantics=("parallel",),   # v7x megacore shards row blocks
            vmem_limit_bytes=vmem_limit,
        ),
    )(x2, scale, bias)

    if cols_p != cols:
        out2 = out2[:, :cols]
    return out2.reshape(N, C, H, W)


if __name__ == "__main__":
    key = jax.random.PRNGKey(0)
    N, C, H, W = 2, 4, 16, 16

    x = jax.random.normal(key, (N, C, H, W), dtype=jnp.float32)
    # Deterministic per-channel buffers (the module's registered buffers).
    mean = jnp.array([0.1, 0.2, 0.3, 0.4], dtype=jnp.float32)
    std = jnp.array([0.5, 0.6, 0.7, 0.8], dtype=jnp.float32)

    out = normalize(x, mean, std)
    out = jax.block_until_ready(out)

    # Reference check in plain JAX (mirrors the PyTorch forward exactly).
    ref = (x - mean.reshape(1, C, 1, 1)) / std.reshape(1, C, 1, 1)
    assert out.shape == (N, C, H, W) and out.dtype == x.dtype
    # scale/bias formulation differs from (x - m)/s by ~1-2 ulp.
    assert jnp.allclose(out, ref, atol=1e-5, rtol=1e-5)

    print("KERNEL_OK")
</pallas_src>

<mosaic_0001>
module attributes {stable_mosaic.version = 11 : i64} {
  func.func @_normalize_kernel(%arg0: i32, %arg1: memref<8x256xf32, #tpu.memory_space<vmem>>, %arg2: memref<8x1xf32, #tpu.memory_space<vmem>>, %arg3: memref<8x1xf32, #tpu.memory_space<vmem>>, %arg4: memref<8x256xf32, #tpu.memory_space<vmem>>) attributes {dimension_semantics = [#tpu.dimension_semantics<parallel>], iteration_bounds = array<i64: 1>, scalar_prefetch = 0 : i64, scratch_operands = 0 : i64, tpu.core_type = #tpu.core_type<tc>, window_params = [{transform_indices = @transform_0, window_bounds = array<i64: 8, 256>}, {pipeline_mode = #tpu.pipeline_mode<synchronous>, transform_indices = @transform_1, window_bounds = array<i64: 8, 1>}, {pipeline_mode = #tpu.pipeline_mode<synchronous>, transform_indices = @transform_2, window_bounds = array<i64: 8, 1>}, {transform_indices = @transform_3, window_bounds = array<i64: 8, 256>}]} {
    %c8_i32 = arith.constant 8 : i32
    %0 = arith.muli %arg0, %c8_i32 : i32
    %1 = tpu.assume_multiple %0, 8 : i32
    %2 = arith.index_cast %1 : i32 to index
    %c0 = arith.constant 0 : index
    %3 = vector.load %arg2[%2, %c0] : memref<8x1xf32, #tpu.memory_space<vmem>>, vector<8x1xf32>
    %4 = arith.index_cast %1 : i32 to index
    %c0_0 = arith.constant 0 : index
    %5 = vector.load %arg3[%4, %c0_0] : memref<8x1xf32, #tpu.memory_space<vmem>>, vector<8x1xf32>
    %c0_1 = arith.constant 0 : index
    %c0_2 = arith.constant 0 : index
    %6 = vector.load %arg1[%c0_1, %c0_2] : memref<8x256xf32, #tpu.memory_space<vmem>>, vector<8x256xf32>
    %7 = vector.broadcast %3 : vector<8x1xf32> to vector<8x256xf32>
    %8 = arith.mulf %6, %7 : vector<8x256xf32>
    %9 = vector.broadcast %5 : vector<8x1xf32> to vector<8x256xf32>
    %10 = arith.addf %8, %9 : vector<8x256xf32>
    %c0_3 = arith.constant 0 : index
    %c0_4 = arith.constant 0 : index
    %11 = vector.load %arg4[%c0_3, %c0_4] : memref<8x256xf32, #tpu.memory_space<vmem>>, vector<8x256xf32>
    tpu.vector_store %arg4[%c0_3, %c0_4], %10 {strides = array<i32>} : memref<8x256xf32, #tpu.memory_space<vmem>>, vector<8x256xf32>,
    return
  }
  func.func @transform_0(%arg0: i32) -> (i32, i32) {
    %c0_i32 = arith.constant 0 : i32
    %c0_i32_0 = arith.constant 0 : i32
    return %arg0, %c0_i32 : i32, i32
  }
  func.func @transform_1(%arg0: i32) -> (i32, i32) {
    %c0_i32 = arith.constant 0 : i32
    %c0_i32_0 = arith.constant 0 : i32
    %c0_i32_1 = arith.constant 0 : i32
    return %c0_i32, %c0_i32_0 : i32, i32
  }
  func.func @transform_2(%arg0: i32) -> (i32, i32) {
    %c0_i32 = arith.constant 0 : i32
    %c0_i32_0 = arith.constant 0 : i32
    %c0_i32_1 = arith.constant 0 : i32
    return %c0_i32, %c0_i32_0 : i32, i32
  }
  func.func @transform_3(%arg0: i32) -> (i32, i32) {
    %c0_i32 = arith.constant 0 : i32
    %c0_i32_0 = arith.constant 0 : i32
    return %arg0, %c0_i32 : i32, i32
  }
}

</mosaic_0001>

<bundles_post_ra>
// kernel: tpu_custom_call.1
= control target key start
LH: loop header
LB: loop body
LE: loop exit
PB: predicated region body
PF: predicated region fallthrough
CT: control target
= control target key end

     0   :  { %v83_v1 = vmov 0   ;;  %s120_s0 = inlined_call_operand.vmem [shape: f32[8,256], index: 0, kind: input, shape index: {}]   ;;  %s121_s1 = inlined_call_operand.vmem [shape: f32[8,1], index: 1, kind: input, shape index: {}]   ;;  %s122_s2 = inlined_call_operand.vmem [shape: f32[8,1], index: 2, kind: input, shape index: {}]   ;;  %s123_s3 = inlined_call_operand.hbm [shape: f32[8,256], index: 3, kind: output, shape index: {}]  }
   0x1   :  { %v17_v0 = vld [vmem:[%s121_s1] sm:$0xff]  ;;  %56 = vset.pattern.permute.xlu0 %v83_v1 }
   0x2   :  { %8 = vsyncpa [#allocation3], 0  ;;  %24 = vperm.xlu0 %56, %v17_v0   ;;  %v19_v2 = vld [vmem:[%s122_s2] sm:$0xff]  ;;  %v21_v5 = vld [vmem:[%s120_s0 + $0x8] sm:$0xff]  ;;  %s84_s1 = smov [#allocation2]   ;;  %s45_s23 = sshll.u32 %s123_s3, 4  ;;  %s46_s23 = int_to_ptr.hbm [resolvable:$true] %s45_s23 }
   0x3   :  { %v20_v4 = vld [vmem:[%s120_s0] sm:$0xff]  ;;  %s43_s20 = sshll.u32 %s84_s1, 4  ;;  %s44_s20 = int_to_ptr.vmem [resolvable:$true] %s43_s20 }
   0xa   :  { %31 = vperm.xlu0 %56, %v19_v2  }
  0x74   :  { %v25_v3 = vpop.permute.xlu0 %24 }
  0x75   :  { %v27_v6 = vmul.f32 %v25_v3, %v20_v4  ;;  %v28_v7 = vmul.f32 %v25_v3, %v21_v5 }
  0x7c   :  { %v32_v8 = vpop.permute.xlu0 %31 }
  0x7d   :  { %v34_v9 = vadd.f32 %v32_v8, %v27_v6  ;;  %v35_v10 = vadd.f32 %v32_v8, %v28_v7 }
  0x7f   :  { %36 = vst [vmem:[#allocation2] sm:$0xff] %v34_v9 }
  0x80   :  { %37 = vst [vmem:[#allocation2 + $0x8] sm:$0xff] %v35_v10 }
  0x81   :  { %48 = dma.vmem_to_hbm [thread:$0]  %s44_s20, 256, %s46_s23, [#allocation3]  }
  0x82   :  { %81 = dma.done.wait [#allocation3], 256  }
  0x83   :  { %82 = vsyncadd [#allocation3], 4294967040 }
  0x84   :  { %53 = vsyncpa [#allocation3], 1 }

</bundles_post_ra>
